<compile_context>
chip_gen: v6e
topology: v6e:2x2x1
jax: 0.10.0
libtpu: 0.0.40
codegen_flags: <defaults>
</compile_context>

<pallas_src>
import functools

import jax
import jax.numpy as jnp
from jax.experimental import pallas as pl
from jax.experimental.pallas import tpu as pltpu

EPS = 1e-5  # PyTorch InstanceNorm2d default


def _resblock_kernel(xslab_ref, m1_ref, m2_ref, aff_ref, out_ref, *,
                     BT, H, W, C, HP):
    """One grid step processes BT images.

    xslab_ref : (BT*HP, WC) f32   lane-dense input slab; each image owns HP rows
                                  (1 zero row on top, image rows 1..H, zero rows
                                  below so HP is a multiple of 8).
    m1/m2     : (3, WC, WC) bf16  banded conv weights (W taps + W zero padding
                                  folded in), one matrix per kernel row ky.
    aff_ref   : (4, WC)     f32   rows = [gamma1, beta1, gamma2, beta2], tiled
                                  across W.
    out_ref   : (BT, H, WC) f32
    """
    WC = W * C
    N = BT * HP
    inv_hw = 1.0 / (H * W)

    g1 = aff_ref[0:1, :]
    b1 = aff_ref[1:2, :]
    g2 = aff_ref[2:3, :]
    b2 = aff_ref[3:4, :]

    def lane_group_mean(rows):
        # rows: (2*BT, WC) f32 = per-image [sum(x); sum(x^2)] stacked along
        # sublanes.  Butterfly-sum the W groups of C lanes with XLU lane rolls
        # (log2(W) steps; MXU and its result FIFO stay free), which also
        # broadcasts the per-channel sums back to every lane; divide by H*W.
        r = rows.shape[0]
        if r % 8:  # pad to a full 8-sublane vreg
            rows = jnp.concatenate(
                [rows, jnp.zeros((8 - r % 8, WC), jnp.float32)], axis=0)
        shift = C
        while shift < WC:
            rows = rows + pltpu.roll(rows, shift, axis=1)
            shift *= 2
        return rows * inv_hw

    def norm_coeffs(stats, gamma, beta, row):
        mu = stats[row:row + 1, :]
        ex2 = stats[row + 1:row + 2, :]
        var = jnp.maximum(ex2 - mu * mu, 0.0)   # guard single-pass cancellation
        scale = gamma * jax.lax.rsqrt(var + EPS)
        return scale, beta - mu * scale

    # ---- conv1: one bf16 cast of the whole slab + 3 batched matmuls ---------
    x_bf = xslab_ref[...].astype(jnp.bfloat16)                        # (N, WC)
    y0 = jnp.dot(x_bf, m1_ref[0], preferred_element_type=jnp.float32)
    y1 = jnp.dot(x_bf, m1_ref[1], preferred_element_type=jnp.float32)
    y2 = jnp.dot(x_bf, m1_ref[2], preferred_element_type=jnp.float32)
    # conv row r of the slab = y0[r] + y1[r+1] + y2[r+2]; the per-image zero
    # pad rows guarantee no cross-image bleed.
    acc1_full = y0[0:N - 2] + y1[1:N - 1] + y2[2:N]                   # (N-2, WC)

    # ---- InstanceNorm1 statistics (per image, per channel) ------------------
    acc1, srows = [], []
    for bi in range(BT):          # BT is capped small; see _pick_batch_tile
        a = acc1_full[bi * HP:bi * HP + H]            # 8-aligned value slice
        acc1.append(a)
        srows.append(jnp.sum(a, axis=0, keepdims=True))
        srows.append(jnp.sum(a * a, axis=0, keepdims=True))
    stats1 = lane_group_mean(jnp.concatenate(srows, axis=0))

    # ---- IN1 affine + ReLU; conv2 input stays in vregs (no scratch) ---------
    h_rows = []
    for bi in range(BT):
        sc, sh = norm_coeffs(stats1, g1, b1, 2 * bi)
        h_rows.append(jnp.maximum(acc1[bi] * sc + sh, 0.0).astype(jnp.bfloat16))
    h_all = jnp.concatenate(h_rows, axis=0)                           # (BT*H, WC)

    # ---- conv2: 3 batched matmuls; H zero-padding folded into shift-add -----
    z0 = jnp.dot(h_all, m2_ref[0], preferred_element_type=jnp.float32)
    z1 = jnp.dot(h_all, m2_ref[1], preferred_element_type=jnp.float32)
    z2 = jnp.dot(h_all, m2_ref[2], preferred_element_type=jnp.float32)

    zrow = jnp.zeros((1, WC), jnp.float32)
    acc2, srows = [], []
    for bi in range(BT):
        o = bi * H
        a = (z1[o:o + H]
             + jnp.concatenate([zrow, z0[o:o + H - 1]], axis=0)   # top pad row
             + jnp.concatenate([z2[o + 1:o + H], zrow], axis=0))  # bottom pad row
        acc2.append(a)
        srows.append(jnp.sum(a, axis=0, keepdims=True))
        srows.append(jnp.sum(a * a, axis=0, keepdims=True))
    stats2 = lane_group_mean(jnp.concatenate(srows, axis=0))

    # ---- IN2 affine + residual add + lane-dense store ------------------------
    for bi in range(BT):
        sc, sh = norm_coeffs(stats2, g2, b2, 2 * bi)
        res = xslab_ref[bi * HP + 1:bi * HP + 1 + H, :]   # original f32 rows
        out_ref[bi, :, :] = res + acc2[bi] * sc + sh


# ----------------------------- wrapper helpers ---------------------------------

def _build_banded_weights(w_hwio, W, C):
    """Fold the 3 W-direction taps (and the W zero-padding) of a 3x3 conv into
    banded (W*C, W*C) matrices, one per kernel row ky:

      M[ky, wp*C + ci, w*C + co] = w_hwio[ky, kx, ci, co]  with wp = w + kx - 1
      (taps with wp outside [0, W) are dropped == zero padding in W)
    """
    mats = []
    for ky in range(3):
        mk = jnp.zeros((W * C, W * C), jnp.float32)
        for kx in range(3):
            band = jnp.eye(W, k=1 - kx, dtype=jnp.float32)  # band[wp, w] = [wp == w+kx-1]
            mk = mk + jnp.kron(band, w_hwio[ky, kx])
        mats.append(mk)
    return jnp.stack(mats)  # (3, W*C, W*C)


def _tensorcores_per_device():
    # v4 / v5p (megacore) and v7x expose 2 TensorCores behind one Pallas device;
    # the "parallel" grid axis only uses both if it has >= 2 steps.  v2/v3 cores
    # and v5e/v6e chips are single-TensorCore devices.
    try:
        kind = jax.devices()[0].device_kind.lower()
    except Exception:
        return 1
    return 2 if any(t in kind for t in ("v4", "v5p", "v7", "7x")) else 1


def _pick_batch_tile(batch, H, WC, n_cores, budget_bytes=16 << 20, max_unroll=4):
    """Images per grid step: honest VMEM accounting (double-buffered in/out
    blocks + in-kernel intermediates), a cap on the static per-image epilogue
    unroll, and >= n_cores grid steps on 2-TensorCore parts."""
    HP = -(-(H + 2) // 8) * 8
    per_image = (2 * HP * WC * 4        # double-buffered f32 input block
                 + 2 * H * WC * 4       # double-buffered f32 output block
                 + 20 * H * WC * 4)     # conv/norm intermediates (vregs/VMEM)
    bt = max(1, min(batch, max_unroll, budget_bytes // max(per_image, 1)))
    if n_cores > 1 and batch >= n_cores:
        bt = min(bt, batch // n_cores)  # give every TensorCore >= 1 grid step
    while batch % bt:
        bt -= 1
    return bt


def residual_block_pallas(x_nchw, w1_oihw, g1, b1, w2_oihw, g2, b2):
    """Forward pass of ResidualBlock. Input/output are NCHW like PyTorch."""
    B, C, H, W = x_nchw.shape
    WC = W * C
    HP = -(-(H + 2) // 8) * 8   # per-image rows in the padded slab (8-aligned)
    assert W & (W - 1) == 0, "power-of-two W required for the lane roll-tree"
    # TODO(synk): non-power-of-two W needs a (WC, WC) channel-averaging matmul
    # fallback for the InstanceNorm statistics.

    # NCHW -> NHWC -> lane-dense (B, H, W*C); pad H with 1 zero row on top and
    # HP-H-1 zero rows below (so every image starts at an 8-aligned slab row),
    # then flatten to a 2-D slab so the conv matmuls batch over the whole tile.
    x = jnp.transpose(x_nchw, (0, 2, 3, 1)).astype(jnp.float32).reshape(B, H, WC)
    xslab = jnp.pad(x, ((0, 0), (1, HP - H - 1), (0, 0))).reshape(B * HP, WC)

    w1_hwio = jnp.transpose(w1_oihw, (2, 3, 1, 0)).astype(jnp.float32)
    w2_hwio = jnp.transpose(w2_oihw, (2, 3, 1, 0)).astype(jnp.float32)
    m1 = _build_banded_weights(w1_hwio, W, C).astype(jnp.bfloat16)
    m2 = _build_banded_weights(w2_hwio, W, C).astype(jnp.bfloat16)

    # All four InstanceNorm affine params packed into a single (4, WC) input.
    aff = jnp.stack([jnp.tile(g1.astype(jnp.float32), W),
                     jnp.tile(b1.astype(jnp.float32), W),
                     jnp.tile(g2.astype(jnp.float32), W),
                     jnp.tile(b2.astype(jnp.float32), W)], axis=0)

    n_tc = _tensorcores_per_device()
    BT = _pick_batch_tile(B, H, WC, n_tc)

    weight_bytes = 2 * (2 * 3 * WC * WC * 2 + 4 * WC * 4)
    block_bytes = (2 * BT * HP * WC * 4 + 2 * BT * H * WC * 4
                   + 20 * BT * H * WC * 4 + weight_bytes)
    vmem_limit = int(min(max(block_bytes + (4 << 20), 16 << 20), 48 << 20))

    kernel = functools.partial(_resblock_kernel, BT=BT, H=H, W=W, C=C, HP=HP)
    out = pl.pallas_call(
        kernel,
        out_shape=jax.ShapeDtypeStruct((B, H, WC), jnp.float32),
        grid=(B // BT,),
        in_specs=[
            pl.BlockSpec((BT * HP, WC), lambda i: (i, 0)),     # input slab
            pl.BlockSpec((3, WC, WC), lambda i: (0, 0, 0)),    # conv1 weights
            pl.BlockSpec((3, WC, WC), lambda i: (0, 0, 0)),    # conv2 weights
            pl.BlockSpec((4, WC), lambda i: (0, 0)),           # affine params
        ],
        out_specs=pl.BlockSpec((BT, H, WC), lambda i: (i, 0, 0)),
        compiler_params=pltpu.CompilerParams(
            dimension_semantics=("parallel",),
            vmem_limit_bytes=vmem_limit),
    )(xslab, m1, m2, aff)

    return jnp.transpose(out.reshape(B, H, W, C), (0, 3, 1, 2))  # back to NCHW


# ----------------------------- plain-JAX glue ---------------------------------

def spectral_normalize(w_oihw):
    # Exact spectral normalization: divide by the top singular value of the
    # (out, in*kh*kw) matrix (the fixed point of PyTorch's power iteration).
    m = w_oihw.reshape(w_oihw.shape[0], -1)
    sigma = jnp.linalg.svd(m, compute_uv=False)[0]
    return w_oihw / sigma


def residual_block_reference(x, w1, g1, b1, w2, g2, b2, *, conv_dtype=jnp.float32):
    """Pure-JAX NCHW reference.  conv_dtype=bfloat16 mirrors the kernel's
    bf16-multiplicand / f32-accumulation convolutions; float32 gives the exact
    PyTorch-float32 semantics."""
    prec = (jax.lax.Precision.HIGHEST if conv_dtype == jnp.float32
            else jax.lax.Precision.DEFAULT)

    def conv(v, w):
        return jax.lax.conv_general_dilated(
            v.astype(conv_dtype), w.astype(conv_dtype),
            window_strides=(1, 1), padding=((1, 1), (1, 1)),
            dimension_numbers=("NCHW", "OIHW", "NCHW"),
            preferred_element_type=jnp.float32, precision=prec)

    def inorm(v, g, b):
        mu = v.mean(axis=(2, 3), keepdims=True)
        var = ((v - mu) ** 2).mean(axis=(2, 3), keepdims=True)
        return (v - mu) * jax.lax.rsqrt(var + EPS) * g[None, :, None, None] \
            + b[None, :, None, None]

    h = jnp.maximum(inorm(conv(x, w1), g1, b1), 0.0)
    return x + inorm(conv(h, w2), g2, b2)


if __name__ == "__main__":
    B, C, H, W = 2, 8, 16, 16  # dim_in == dim_out; W*C == 128 (one full lane tile)

    key = jax.random.PRNGKey(0)
    k1, k2, k3, k4, k5, k6, k7 = jax.random.split(key, 7)

    x = jax.random.normal(k1, (B, C, H, W), jnp.float32)

    # Conv weights (OIHW, no bias) with spectral normalization applied.
    w1 = spectral_normalize(0.3 * jax.random.normal(k2, (C, C, 3, 3), jnp.float32))
    w2 = spectral_normalize(0.3 * jax.random.normal(k3, (C, C, 3, 3), jnp.float32))

    # InstanceNorm2d(affine=True) params (perturbed from the 1/0 defaults so the
    # affine path is actually exercised).
    g1 = 1.0 + 0.1 * jax.random.normal(k4, (C,), jnp.float32)
    b1 = 0.1 * jax.random.normal(k5, (C,), jnp.float32)
    g2 = 1.0 + 0.1 * jax.random.normal(k6, (C,), jnp.float32)
    b2 = 0.1 * jax.random.normal(k7, (C,), jnp.float32)

    out = jax.block_until_ready(
        residual_block_pallas(x, w1, g1, b1, w2, g2, b2))
    assert out.shape == (B, C, H, W), out.shape

    # (1) Structural check against a reference with matched conv precision
    #     (bf16 multiplicands, f32 accumulation).
    ref_matched = residual_block_reference(x, w1, g1, b1, w2, g2, b2,
                                           conv_dtype=jnp.bfloat16)
    err_matched = float(jnp.max(jnp.abs(out - ref_matched)))
    assert jnp.allclose(out, ref_matched, atol=1e-3, rtol=1e-3), err_matched

    # (2) End-to-end check against the full-f32 module semantics; the only
    #     deviation is the documented bf16 rounding of the conv multiplicands.
    ref_f32 = residual_block_reference(x, w1, g1, b1, w2, g2, b2,
                                       conv_dtype=jnp.float32)
    err_f32 = float(jnp.max(jnp.abs(out - ref_f32)))
    assert jnp.allclose(out, ref_f32, atol=5e-2, rtol=5e-2), err_f32

    print("KERNEL_OK")
</pallas_src>

<mosaic_0001>
module attributes {stable_mosaic.version = 11 : i64} {
  func.func @_resblock_kernel(%arg0: i32, %arg1: memref<48x128xf32, #tpu.memory_space<vmem>>, %arg2: memref<3x128x128xbf16, #tpu.memory_space<vmem>>, %arg3: memref<3x128x128xbf16, #tpu.memory_space<vmem>>, %arg4: memref<4x128xf32, #tpu.memory_space<vmem>>, %arg5: memref<2x16x128xf32, #tpu.memory_space<vmem>>) attributes {dimension_semantics = [#tpu.dimension_semantics<parallel>], iteration_bounds = array<i64: 1>, scalar_prefetch = 0 : i64, scratch_operands = 0 : i64, tpu.core_type = #tpu.core_type<tc>, window_params = [{transform_indices = @transform_0, window_bounds = array<i64: 48, 128>}, {pipeline_mode = #tpu.pipeline_mode<synchronous>, transform_indices = @transform_1, window_bounds = array<i64: 3, 128, 128>}, {pipeline_mode = #tpu.pipeline_mode<synchronous>, transform_indices = @transform_2, window_bounds = array<i64: 3, 128, 128>}, {pipeline_mode = #tpu.pipeline_mode<synchronous>, transform_indices = @transform_3, window_bounds = array<i64: 4, 128>}, {transform_indices = @transform_4, window_bounds = array<i64: 2, 16, 128>}]} {
    %c0 = arith.constant 0 : index
    %c0_0 = arith.constant 0 : index
    %0 = vector.load %arg4[%c0, %c0_0] : memref<4x128xf32, #tpu.memory_space<vmem>>, vector<1x128xf32>
    %c1 = arith.constant 1 : index
    %c0_1 = arith.constant 0 : index
    %1 = vector.load %arg4[%c1, %c0_1] : memref<4x128xf32, #tpu.memory_space<vmem>>, vector<1x128xf32>
    %c2 = arith.constant 2 : index
    %c0_2 = arith.constant 0 : index
    %2 = vector.load %arg4[%c2, %c0_2] : memref<4x128xf32, #tpu.memory_space<vmem>>, vector<1x128xf32>
    %c3 = arith.constant 3 : index
    %c0_3 = arith.constant 0 : index
    %3 = vector.load %arg4[%c3, %c0_3] : memref<4x128xf32, #tpu.memory_space<vmem>>, vector<1x128xf32>
    %c0_4 = arith.constant 0 : index
    %c0_5 = arith.constant 0 : index
    %4 = vector.load %arg1[%c0_4, %c0_5] : memref<48x128xf32, #tpu.memory_space<vmem>>, vector<48x128xf32>
    %5 = arith.truncf %4 : vector<48x128xf32> to vector<48x128xbf16>
    %c0_6 = arith.constant 0 : index
    %c0_7 = arith.constant 0 : index
    %c0_8 = arith.constant 0 : index
    %6 = vector.load %arg2[%c0_6, %c0_7, %c0_8] : memref<3x128x128xbf16, #tpu.memory_space<vmem>>, vector<1x128x128xbf16>
    %7 = vector.shape_cast %6 : vector<1x128x128xbf16> to vector<128x128xbf16>
    %cst = arith.constant dense<0.000000e+00> : vector<48x128xf32>
    %8 = tpu.matmul %5, %7, %cst {dimension_numbers = #tpu.dot_dimension_numbers<[1], [0], [0], [1], [0, 0, 1, 1], [], []>} : vector<48x128xbf16>, vector<128x128xbf16>, vector<48x128xf32> -> vector<48x128xf32>
    %c1_9 = arith.constant 1 : index
    %c0_10 = arith.constant 0 : index
    %c0_11 = arith.constant 0 : index
    %9 = vector.load %arg2[%c1_9, %c0_10, %c0_11] : memref<3x128x128xbf16, #tpu.memory_space<vmem>>, vector<1x128x128xbf16>
    %10 = vector.shape_cast %9 : vector<1x128x128xbf16> to vector<128x128xbf16>
    %cst_12 = arith.constant dense<0.000000e+00> : vector<48x128xf32>
    %11 = tpu.matmul %5, %10, %cst_12 {dimension_numbers = #tpu.dot_dimension_numbers<[1], [0], [0], [1], [0, 0, 1, 1], [], []>} : vector<48x128xbf16>, vector<128x128xbf16>, vector<48x128xf32> -> vector<48x128xf32>
    %c2_13 = arith.constant 2 : index
    %c0_14 = arith.constant 0 : index
    %c0_15 = arith.constant 0 : index
    %12 = vector.load %arg2[%c2_13, %c0_14, %c0_15] : memref<3x128x128xbf16, #tpu.memory_space<vmem>>, vector<1x128x128xbf16>
    %13 = vector.shape_cast %12 : vector<1x128x128xbf16> to vector<128x128xbf16>
    %cst_16 = arith.constant dense<0.000000e+00> : vector<48x128xf32>
    %14 = tpu.matmul %5, %13, %cst_16 {dimension_numbers = #tpu.dot_dimension_numbers<[1], [0], [0], [1], [0, 0, 1, 1], [], []>} : vector<48x128xbf16>, vector<128x128xbf16>, vector<48x128xf32> -> vector<48x128xf32>
    %15 = vector.extract_strided_slice %8 {offsets = [0, 0], sizes = [46, 128], strides = [1, 1]} : vector<48x128xf32> to vector<46x128xf32>
    %16 = vector.extract_strided_slice %11 {offsets = [1, 0], sizes = [46, 128], strides = [1, 1]} : vector<48x128xf32> to vector<46x128xf32>
    %17 = arith.addf %15, %16 : vector<46x128xf32>
    %18 = vector.extract_strided_slice %14 {offsets = [2, 0], sizes = [46, 128], strides = [1, 1]} : vector<48x128xf32> to vector<46x128xf32>
    %19 = arith.addf %17, %18 : vector<46x128xf32>
    %20 = vector.extract_strided_slice %19 {offsets = [0, 0], sizes = [16, 128], strides = [1, 1]} : vector<46x128xf32> to vector<16x128xf32>
    %cst_17 = arith.constant dense<0.000000e+00> : vector<128xf32>
    %21 = vector.multi_reduction <add>, %20, %cst_17 [0] : vector<16x128xf32> to vector<128xf32>
    %22 = vector.shape_cast %21 : vector<128xf32> to vector<1x128xf32>
    %23 = arith.mulf %20, %20 : vector<16x128xf32>
    %cst_18 = arith.constant dense<0.000000e+00> : vector<128xf32>
    %24 = vector.multi_reduction <add>, %23, %cst_18 [0] : vector<16x128xf32> to vector<128xf32>
    %25 = vector.shape_cast %24 : vector<128xf32> to vector<1x128xf32>
    %26 = vector.extract_strided_slice %19 {offsets = [24, 0], sizes = [16, 128], strides = [1, 1]} : vector<46x128xf32> to vector<16x128xf32>
    %cst_19 = arith.constant dense<0.000000e+00> : vector<128xf32>
    %27 = vector.multi_reduction <add>, %26, %cst_19 [0] : vector<16x128xf32> to vector<128xf32>
    %28 = vector.shape_cast %27 : vector<128xf32> to vector<1x128xf32>
    %29 = arith.mulf %26, %26 : vector<16x128xf32>
    %cst_20 = arith.constant dense<0.000000e+00> : vector<128xf32>
    %30 = vector.multi_reduction <add>, %29, %cst_20 [0] : vector<16x128xf32> to vector<128xf32>
    %31 = vector.shape_cast %30 : vector<128xf32> to vector<1x128xf32>
    %32 = tpu.concatenate %22, %25, %28, %31 in 0 : vector<1x128xf32>, vector<1x128xf32>, vector<1x128xf32>, vector<1x128xf32> -> vector<4x128xf32>
    %cst_21 = arith.constant 0.000000e+00 : f32
    %33 = vector.broadcast %cst_21 : f32 to vector<4x128xf32>
    %34 = tpu.concatenate %32, %33 in 0 : vector<4x128xf32>, vector<4x128xf32> -> vector<8x128xf32>
    %c8_i32 = arith.constant 8 : i32
    %35 = tpu.dynamic_rotate %34 by %c8_i32 dim 1 : vector<8x128xf32>, i32 -> vector<8x128xf32>
    %36 = arith.addf %34, %35 : vector<8x128xf32>
    %c16_i32 = arith.constant 16 : i32
    %37 = tpu.dynamic_rotate %36 by %c16_i32 dim 1 : vector<8x128xf32>, i32 -> vector<8x128xf32>
    %38 = arith.addf %36, %37 : vector<8x128xf32>
    %c32_i32 = arith.constant 32 : i32
    %39 = tpu.dynamic_rotate %38 by %c32_i32 dim 1 : vector<8x128xf32>, i32 -> vector<8x128xf32>
    %40 = arith.addf %38, %39 : vector<8x128xf32>
    %c64_i32 = arith.constant 64 : i32
    %41 = tpu.dynamic_rotate %40 by %c64_i32 dim 1 : vector<8x128xf32>, i32 -> vector<8x128xf32>
    %42 = arith.addf %40, %41 : vector<8x128xf32>
    %cst_22 = arith.constant 3.906250e-03 : f32
    %43 = vector.broadcast %cst_22 : f32 to vector<8x128xf32>
    %44 = arith.mulf %42, %43 : vector<8x128xf32>
    %45 = vector.extract_strided_slice %44 {offsets = [0, 0], sizes = [1, 128], strides = [1, 1]} : vector<8x128xf32> to vector<1x128xf32>
    %46 = vector.extract_strided_slice %44 {offsets = [1, 0], sizes = [1, 128], strides = [1, 1]} : vector<8x128xf32> to vector<1x128xf32>
    %47 = arith.mulf %45, %45 : vector<1x128xf32>
    %48 = arith.subf %46, %47 : vector<1x128xf32>
    %cst_23 = arith.constant 0.000000e+00 : f32
    %49 = vector.broadcast %cst_23 : f32 to vector<1x128xf32>
    %50 = arith.maximumf %48, %49 : vector<1x128xf32>
    %cst_24 = arith.constant 9.99999974E-6 : f32
    %51 = vector.broadcast %cst_24 : f32 to vector<1x128xf32>
    %52 = arith.addf %50, %51 : vector<1x128xf32>
    %53 = math.rsqrt %52 : vector<1x128xf32>
    %54 = arith.mulf %0, %53 : vector<1x128xf32>
    %55 = arith.mulf %45, %54 : vector<1x128xf32>
    %56 = arith.subf %1, %55 : vector<1x128xf32>
    %57 = vector.broadcast %54 : vector<1x128xf32> to vector<16x128xf32>
    %58 = arith.mulf %20, %57 : vector<16x128xf32>
    %59 = vector.broadcast %56 : vector<1x128xf32> to vector<16x128xf32>
    %60 = arith.addf %58, %59 : vector<16x128xf32>
    %cst_25 = arith.constant 0.000000e+00 : f32
    %61 = vector.broadcast %cst_25 : f32 to vector<16x128xf32>
    %62 = arith.maximumf %60, %61 : vector<16x128xf32>
    %63 = arith.truncf %62 : vector<16x128xf32> to vector<16x128xbf16>
    %64 = vector.extract_strided_slice %44 {offsets = [2, 0], sizes = [1, 128], strides = [1, 1]} : vector<8x128xf32> to vector<1x128xf32>
    %65 = vector.extract_strided_slice %44 {offsets = [3, 0], sizes = [1, 128], strides = [1, 1]} : vector<8x128xf32> to vector<1x128xf32>
    %66 = arith.mulf %64, %64 : vector<1x128xf32>
    %67 = arith.subf %65, %66 : vector<1x128xf32>
    %cst_26 = arith.constant 0.000000e+00 : f32
    %68 = vector.broadcast %cst_26 : f32 to vector<1x128xf32>
    %69 = arith.maximumf %67, %68 : vector<1x128xf32>
    %cst_27 = arith.constant 9.99999974E-6 : f32
    %70 = vector.broadcast %cst_27 : f32 to vector<1x128xf32>
    %71 = arith.addf %69, %70 : vector<1x128xf32>
    %72 = math.rsqrt %71 : vector<1x128xf32>
    %73 = arith.mulf %0, %72 : vector<1x128xf32>
    %74 = arith.mulf %64, %73 : vector<1x128xf32>
    %75 = arith.subf %1, %74 : vector<1x128xf32>
    %76 = vector.broadcast %73 : vector<1x128xf32> to vector<16x128xf32>
    %77 = arith.mulf %26, %76 : vector<16x128xf32>
    %78 = vector.broadcast %75 : vector<1x128xf32> to vector<16x128xf32>
    %79 = arith.addf %77, %78 : vector<16x128xf32>
    %cst_28 = arith.constant 0.000000e+00 : f32
    %80 = vector.broadcast %cst_28 : f32 to vector<16x128xf32>
    %81 = arith.maximumf %79, %80 : vector<16x128xf32>
    %82 = arith.truncf %81 : vector<16x128xf32> to vector<16x128xbf16>
    %83 = tpu.concatenate %63, %82 in 0 : vector<16x128xbf16>, vector<16x128xbf16> -> vector<32x128xbf16>
    %c0_29 = arith.constant 0 : index
    %c0_30 = arith.constant 0 : index
    %c0_31 = arith.constant 0 : index
    %84 = vector.load %arg3[%c0_29, %c0_30, %c0_31] : memref<3x128x128xbf16, #tpu.memory_space<vmem>>, vector<1x128x128xbf16>
    %85 = vector.shape_cast %84 : vector<1x128x128xbf16> to vector<128x128xbf16>
    %cst_32 = arith.constant dense<0.000000e+00> : vector<32x128xf32>
    %86 = tpu.matmul %83, %85, %cst_32 {dimension_numbers = #tpu.dot_dimension_numbers<[1], [0], [0], [1], [0, 0, 1, 1], [], []>} : vector<32x128xbf16>, vector<128x128xbf16>, vector<32x128xf32> -> vector<32x128xf32>
    %c1_33 = arith.constant 1 : index
    %c0_34 = arith.constant 0 : index
    %c0_35 = arith.constant 0 : index
    %87 = vector.load %arg3[%c1_33, %c0_34, %c0_35] : memref<3x128x128xbf16, #tpu.memory_space<vmem>>, vector<1x128x128xbf16>
    %88 = vector.shape_cast %87 : vector<1x128x128xbf16> to vector<128x128xbf16>
    %cst_36 = arith.constant dense<0.000000e+00> : vector<32x128xf32>
    %89 = tpu.matmul %83, %88, %cst_36 {dimension_numbers = #tpu.dot_dimension_numbers<[1], [0], [0], [1], [0, 0, 1, 1], [], []>} : vector<32x128xbf16>, vector<128x128xbf16>, vector<32x128xf32> -> vector<32x128xf32>
    %c2_37 = arith.constant 2 : index
    %c0_38 = arith.constant 0 : index
    %c0_39 = arith.constant 0 : index
    %90 = vector.load %arg3[%c2_37, %c0_38, %c0_39] : memref<3x128x128xbf16, #tpu.memory_space<vmem>>, vector<1x128x128xbf16>
    %91 = vector.shape_cast %90 : vector<1x128x128xbf16> to vector<128x128xbf16>
    %cst_40 = arith.constant dense<0.000000e+00> : vector<32x128xf32>
    %92 = tpu.matmul %83, %91, %cst_40 {dimension_numbers = #tpu.dot_dimension_numbers<[1], [0], [0], [1], [0, 0, 1, 1], [], []>} : vector<32x128xbf16>, vector<128x128xbf16>, vector<32x128xf32> -> vector<32x128xf32>
    %cst_41 = arith.constant 0.000000e+00 : f32
    %93 = vector.broadcast %cst_41 : f32 to vector<1x128xf32>
    %94 = vector.extract_strided_slice %89 {offsets = [0, 0], sizes = [16, 128], strides = [1, 1]} : vector<32x128xf32> to vector<16x128xf32>
    %95 = vector.extract_strided_slice %86 {offsets = [0, 0], sizes = [15, 128], strides = [1, 1]} : vector<32x128xf32> to vector<15x128xf32>
    %96 = tpu.concatenate %93, %95 in 0 : vector<1x128xf32>, vector<15x128xf32> -> vector<16x128xf32>
    %97 = arith.addf %94, %96 : vector<16x128xf32>
    %98 = vector.extract_strided_slice %92 {offsets = [1, 0], sizes = [15, 128], strides = [1, 1]} : vector<32x128xf32> to vector<15x128xf32>
    %99 = tpu.concatenate %98, %93 in 0 : vector<15x128xf32>, vector<1x128xf32> -> vector<16x128xf32>
    %100 = arith.addf %97, %99 : vector<16x128xf32>
    %cst_42 = arith.constant dense<0.000000e+00> : vector<128xf32>
    %101 = vector.multi_reduction <add>, %100, %cst_42 [0] : vector<16x128xf32> to vector<128xf32>
    %102 = vector.shape_cast %101 : vector<128xf32> to vector<1x128xf32>
    %103 = arith.mulf %100, %100 : vector<16x128xf32>
    %cst_43 = arith.constant dense<0.000000e+00> : vector<128xf32>
    %104 = vector.multi_reduction <add>, %103, %cst_43 [0] : vector<16x128xf32> to vector<128xf32>
    %105 = vector.shape_cast %104 : vector<128xf32> to vector<1x128xf32>
    %106 = vector.extract_strided_slice %89 {offsets = [16, 0], sizes = [16, 128], strides = [1, 1]} : vector<32x128xf32> to vector<16x128xf32>
    %107 = vector.extract_strided_slice %86 {offsets = [16, 0], sizes = [15, 128], strides = [1, 1]} : vector<32x128xf32> to vector<15x128xf32>
    %108 = tpu.concatenate %93, %107 in 0 : vector<1x128xf32>, vector<15x128xf32> -> vector<16x128xf32>
    %109 = arith.addf %106, %108 : vector<16x128xf32>
    %110 = vector.extract_strided_slice %92 {offsets = [17, 0], sizes = [15, 128], strides = [1, 1]} : vector<32x128xf32> to vector<15x128xf32>
    %111 = tpu.concatenate %110, %93 in 0 : vector<15x128xf32>, vector<1x128xf32> -> vector<16x128xf32>
    %112 = arith.addf %109, %111 : vector<16x128xf32>
    %cst_44 = arith.constant dense<0.000000e+00> : vector<128xf32>
    %113 = vector.multi_reduction <add>, %112, %cst_44 [0] : vector<16x128xf32> to vector<128xf32>
    %114 = vector.shape_cast %113 : vector<128xf32> to vector<1x128xf32>
    %115 = arith.mulf %112, %112 : vector<16x128xf32>
    %cst_45 = arith.constant dense<0.000000e+00> : vector<128xf32>
    %116 = vector.multi_reduction <add>, %115, %cst_45 [0] : vector<16x128xf32> to vector<128xf32>
    %117 = vector.shape_cast %116 : vector<128xf32> to vector<1x128xf32>
    %118 = tpu.concatenate %102, %105, %114, %117 in 0 : vector<1x128xf32>, vector<1x128xf32>, vector<1x128xf32>, vector<1x128xf32> -> vector<4x128xf32>
    %cst_46 = arith.constant 0.000000e+00 : f32
    %119 = vector.broadcast %cst_46 : f32 to vector<4x128xf32>
    %120 = tpu.concatenate %118, %119 in 0 : vector<4x128xf32>, vector<4x128xf32> -> vector<8x128xf32>
    %c8_i32_47 = arith.constant 8 : i32
    %121 = tpu.dynamic_rotate %120 by %c8_i32_47 dim 1 : vector<8x128xf32>, i32 -> vector<8x128xf32>
    %122 = arith.addf %120, %121 : vector<8x128xf32>
    %c16_i32_48 = arith.constant 16 : i32
    %123 = tpu.dynamic_rotate %122 by %c16_i32_48 dim 1 : vector<8x128xf32>, i32 -> vector<8x128xf32>
    %124 = arith.addf %122, %123 : vector<8x128xf32>
    %c32_i32_49 = arith.constant 32 : i32
    %125 = tpu.dynamic_rotate %124 by %c32_i32_49 dim 1 : vector<8x128xf32>, i32 -> vector<8x128xf32>
    %126 = arith.addf %124, %125 : vector<8x128xf32>
    %c64_i32_50 = arith.constant 64 : i32
    %127 = tpu.dynamic_rotate %126 by %c64_i32_50 dim 1 : vector<8x128xf32>, i32 -> vector<8x128xf32>
    %128 = arith.addf %126, %127 : vector<8x128xf32>
    %cst_51 = arith.constant 3.906250e-03 : f32
    %129 = vector.broadcast %cst_51 : f32 to vector<8x128xf32>
    %130 = arith.mulf %128, %129 : vector<8x128xf32>
    %131 = vector.extract_strided_slice %130 {offsets = [0, 0], sizes = [1, 128], strides = [1, 1]} : vector<8x128xf32> to vector<1x128xf32>
    %132 = vector.extract_strided_slice %130 {offsets = [1, 0], sizes = [1, 128], strides = [1, 1]} : vector<8x128xf32> to vector<1x128xf32>
    %133 = arith.mulf %131, %131 : vector<1x128xf32>
    %134 = arith.subf %132, %133 : vector<1x128xf32>
    %cst_52 = arith.constant 0.000000e+00 : f32
    %135 = vector.broadcast %cst_52 : f32 to vector<1x128xf32>
    %136 = arith.maximumf %134, %135 : vector<1x128xf32>
    %cst_53 = arith.constant 9.99999974E-6 : f32
    %137 = vector.broadcast %cst_53 : f32 to vector<1x128xf32>
    %138 = arith.addf %136, %137 : vector<1x128xf32>
    %139 = math.rsqrt %138 : vector<1x128xf32>
    %140 = arith.mulf %2, %139 : vector<1x128xf32>
    %141 = arith.mulf %131, %140 : vector<1x128xf32>
    %142 = arith.subf %3, %141 : vector<1x128xf32>
    %c1_54 = arith.constant 1 : index
    %c0_55 = arith.constant 0 : index
    %143 = vector.load %arg1[%c1_54, %c0_55] : memref<48x128xf32, #tpu.memory_space<vmem>>, vector<16x128xf32>
    %144 = vector.broadcast %140 : vector<1x128xf32> to vector<16x128xf32>
    %145 = arith.mulf %100, %144 : vector<16x128xf32>
    %146 = arith.addf %143, %145 : vector<16x128xf32>
    %147 = vector.broadcast %142 : vector<1x128xf32> to vector<16x128xf32>
    %148 = arith.addf %146, %147 : vector<16x128xf32>
    %c0_56 = arith.constant 0 : index
    %c0_57 = arith.constant 0 : index
    %c0_58 = arith.constant 0 : index
    %149 = vector.load %arg5[%c0_56, %c0_57, %c0_58] : memref<2x16x128xf32, #tpu.memory_space<vmem>>, vector<1x16x128xf32>
    %150 = vector.shape_cast %149 : vector<1x16x128xf32> to vector<16x128xf32>
    %151 = vector.shape_cast %148 : vector<16x128xf32> to vector<1x16x128xf32>
    tpu.vector_store %arg5[%c0_56, %c0_57, %c0_58], %151 {strides = array<i32>} : memref<2x16x128xf32, #tpu.memory_space<vmem>>, vector<1x16x128xf32>,
    %152 = vector.extract_strided_slice %130 {offsets = [2, 0], sizes = [1, 128], strides = [1, 1]} : vector<8x128xf32> to vector<1x128xf32>
    %153 = vector.extract_strided_slice %130 {offsets = [3, 0], sizes = [1, 128], strides = [1, 1]} : vector<8x128xf32> to vector<1x128xf32>
    %154 = arith.mulf %152, %152 : vector<1x128xf32>
    %155 = arith.subf %153, %154 : vector<1x128xf32>
    %cst_59 = arith.constant 0.000000e+00 : f32
    %156 = vector.broadcast %cst_59 : f32 to vector<1x128xf32>
    %157 = arith.maximumf %155, %156 : vector<1x128xf32>
    %cst_60 = arith.constant 9.99999974E-6 : f32
    %158 = vector.broadcast %cst_60 : f32 to vector<1x128xf32>
    %159 = arith.addf %157, %158 : vector<1x128xf32>
    %160 = math.rsqrt %159 : vector<1x128xf32>
    %161 = arith.mulf %2, %160 : vector<1x128xf32>
    %162 = arith.mulf %152, %161 : vector<1x128xf32>
    %163 = arith.subf %3, %162 : vector<1x128xf32>
    %c25 = arith.constant 25 : index
    %c0_61 = arith.constant 0 : index
    %164 = vector.load %arg1[%c25, %c0_61] : memref<48x128xf32, #tpu.memory_space<vmem>>, vector<16x128xf32>
    %165 = vector.broadcast %161 : vector<1x128xf32> to vector<16x128xf32>
    %166 = arith.mulf %112, %165 : vector<16x128xf32>
    %167 = arith.addf %164, %166 : vector<16x128xf32>
    %168 = vector.broadcast %163 : vector<1x128xf32> to vector<16x128xf32>
    %169 = arith.addf %167, %168 : vector<16x128xf32>
    %c1_62 = arith.constant 1 : index
    %c0_63 = arith.constant 0 : index
    %c0_64 = arith.constant 0 : index
    %170 = vector.load %arg5[%c1_62, %c0_63, %c0_64] : memref<2x16x128xf32, #tpu.memory_space<vmem>>, vector<1x16x128xf32>
    %171 = vector.shape_cast %170 : vector<1x16x128xf32> to vector<16x128xf32>
    %172 = vector.shape_cast %169 : vector<16x128xf32> to vector<1x16x128xf32>
    tpu.vector_store %arg5[%c1_62, %c0_63, %c0_64], %172 {strides = array<i32>} : memref<2x16x128xf32, #tpu.memory_space<vmem>>, vector<1x16x128xf32>,
    return
  }
  func.func @transform_0(%arg0: i32) -> (i32, i32) {
    %c0_i32 = arith.constant 0 : i32
    %c0_i32_0 = arith.constant 0 : i32
    return %arg0, %c0_i32 : i32, i32
  }
  func.func @transform_1(%arg0: i32) -> (i32, i32, i32) {
    %c0_i32 = arith.constant 0 : i32
    %c0_i32_0 = arith.constant 0 : i32
    %c0_i32_1 = arith.constant 0 : i32
    %c0_i32_2 = arith.constant 0 : i32
    return %c0_i32, %c0_i32_0, %c0_i32_1 : i32, i32, i32
  }
  func.func @transform_2(%arg0: i32) -> (i32, i32, i32) {
    %c0_i32 = arith.constant 0 : i32
    %c0_i32_0 = arith.constant 0 : i32
    %c0_i32_1 = arith.constant 0 : i32
    %c0_i32_2 = arith.constant 0 : i32
    return %c0_i32, %c0_i32_0, %c0_i32_1 : i32, i32, i32
  }
  func.func @transform_3(%arg0: i32) -> (i32, i32) {
    %c0_i32 = arith.constant 0 : i32
    %c0_i32_0 = arith.constant 0 : i32
    %c0_i32_1 = arith.constant 0 : i32
    return %c0_i32, %c0_i32_0 : i32, i32
  }
  func.func @transform_4(%arg0: i32) -> (i32, i32, i32) {
    %c0_i32 = arith.constant 0 : i32
    %c0_i32_0 = arith.constant 0 : i32
    %c0_i32_1 = arith.constant 0 : i32
    return %arg0, %c0_i32, %c0_i32_0 : i32, i32, i32
  }
}

</mosaic_0001>

<bundles_post_ra>
// kernel: tpu_custom_call.1
= control target key start
LH: loop header
LB: loop body
LE: loop exit
PB: predicated region body
PF: predicated region fallthrough
CT: control target
= control target key end

     0   :  { %9 = vsyncpa [#allocation3], 0  ;;  %s1712_s0 = inlined_call_operand.hbm [shape: f32[48,128], index: 0, kind: input, shape index: {}]   ;;  %s1713_s1 = inlined_call_operand.hbm [shape: bf16[3,128,128], index: 1, kind: input, shape index: {}]   ;;  %s1714_s2 = inlined_call_operand.hbm [shape: bf16[3,128,128], index: 2, kind: input, shape index: {}]   ;;  %s1715_s3 = inlined_call_operand.vmem [shape: f32[4,128], index: 3, kind: input, shape index: {}]   ;;  %s1716_s4 = inlined_call_operand.hbm [shape: f32[2,16,128], index: 4, kind: output, shape index: {}]  }
   0x1   :  { %10 = vsyncpa [#allocation6], 0 }
   0x2   :  { %11 = vsyncpa [#allocation4], 0  ;;  %s1509_s15 = smov [#allocation5]  }
   0x3   :  { %s29_s16 = sshll.u32 %s1509_s15, 4  ;;  %s30_s16 = int_to_ptr.vmem [resolvable:$true] %s29_s16 }
   0x4   :  { %s1431_s17 = scalar_lea.vmem %s30_s16, 3072  ;;  %p1436_p1 = scmp.lt.s32.totalorder %s30_s16, %s30_s16 }
   0x5   :  { %p1432_p0 = scmp.ne.s32.totalorder %s30_s16, %s1431_s17  ;;  %p1437_p2 = scmp.lt.s32.totalorder %s1431_s17, %s1431_s17 }
   0x7   :  { %p1438_p3 = por %p1437_p2, %p1436_p1 }
   0x9   :  { %p1439_p4 = pnand %p1438_p3, %p1432_p0 }
   0xb   :  { %1442 = shalt.err (!%p1439_p4)
}
   0xc   :  { %s1510_s18 = smov 64   ;;  %s1511_s19 = smov 4  }
   0xd   :  { %35 = dma.hbm_to_vmem [thread:$0]  %s1713_s1, 3072, %s30_s16, [#allocation6], %s1510_s18, %s1510_s18, %s1511_s19  }
   0xe   :  { %s1512_s22 = smov [#allocation2]  }
   0xf   :  { %s17_s23 = sshll.u32 %s1512_s22, 4  ;;  %s18_s23 = int_to_ptr.vmem [resolvable:$true] %s17_s23 }
  0x10   :  { %s1451_s24 = scalar_lea.vmem %s18_s23, 768  ;;  %p1456_p6 = scmp.lt.s32.totalorder %s18_s23, %s18_s23 }
  0x11   :  { %p1452_p5 = scmp.ne.s32.totalorder %s18_s23, %s1451_s24  ;;  %p1457_p7 = scmp.lt.s32.totalorder %s1451_s24, %s1451_s24 }
  0x13   :  { %p1458_p8 = por %p1457_p7, %p1456_p6 }
  0x15   :  { %p1459_p9 = pnand %p1458_p8, %p1452_p5 }
  0x17   :  { %1462 = shalt.err (!%p1459_p9)
}
  0x18   :  { %s1513_s25 = smov 128   ;;  %s1514_s26 = smov 8  }
  0x19   :  { %23 = dma.hbm_to_vmem [thread:$0]  %s1712_s0, 768, %s18_s23, [#allocation3], %s1513_s25, %s1513_s25, %s1514_s26  }
  0x1a   :  { %s1515_s1 = smov [#allocation7]  }
  0x1b   :  { %s41_s29 = sshll.u32 %s1515_s1, 4  ;;  %s42_s29 = int_to_ptr.vmem [resolvable:$true] %s41_s29 }
  0x1c   :  { %s1471_s30 = scalar_lea.vmem %s42_s29, 3072  ;;  %p1476_p11 = scmp.lt.s32.totalorder %s42_s29, %s42_s29 }
  0x1d   :  { %p1472_p10 = scmp.ne.s32.totalorder %s42_s29, %s1471_s30  ;;  %p1477_p12 = scmp.lt.s32.totalorder %s1471_s30, %s1471_s30 }
  0x1f   :  { %p1478_p13 = por %p1477_p12, %p1476_p11 }
  0x21   :  { %p1479_p0 = pnand %p1478_p13, %p1472_p10 }
  0x23   :  { %1482 = shalt.err (!%p1479_p0)
}
  0x24   :  { %47 = dma.hbm_to_vmem [thread:$0]  %s1714_s2, 3072, %s42_s29, [#allocation6], %s1510_s18, %s1510_s18, %s1511_s19  }
  0x25   :  { %1503 = dma.done.wait [#allocation3], 768  }
  0x26   :  { %1504 = vsyncadd [#allocation3], 4294966528 }
  0x27   :  { %1505 = dma.done.wait [#allocation6], 6144  }
  0x28   :  { %1506 = vsyncadd [#allocation6], 4294961152  ;;  %v1516_v0 = vmov 0.0   ;;  %vm1517_vm0 = vmmov 0   ;;  %v1371_v1 = vld [vmem:[#allocation5 + $0x38] sm:$0xff]   ;;  %v1373_v3 = vld [vmem:[#allocation5 + $0x30] sm:$0xff]  }
  0x29   :  { %1215 = vmatprep.subr.bf16.mxu0 %v1516_v0  ;;  %1243 = vmatprep.subr.bf16.mxu1 %v1516_v0  ;;  %v1372_v2 = vld [vmem:[#allocation5 + $0x78] sm:$0xff]   ;;  %v1374_v4 = vld [vmem:[#allocation5 + $0x70] sm:$0xff]   ;;  %v1375_v5 = vld [vmem:[#allocation5 + $0x28] sm:$0xff]   ;;  %vm442_vm1 = vcmask 1046528   ;;  %vm467_vm2 = vcmask 1045504   ;;  %vm518_vm3 = vcmask 1040384  }
  0x2a   :  { %1231 = vmatprep.mubr.msk.bf16.mxu0 %vm1517_vm0, %v1516_v0  ;;  %1259 = vmatprep.mubr.msk.bf16.mxu1 %vm1517_vm0, %v1516_v0  ;;  %v1376_v6 = vld [vmem:[#allocation5 + $0x68] sm:$0xff]   ;;  %v1377_v7 = vld [vmem:[#allocation5 + $0x20] sm:$0xff]   ;;  %v1379_v9 = vld [vmem:[#allocation5 + $0x18] sm:$0xff]   ;;  %vm520_vm4 = vcmask 1041408   ;;  %vm522_vm5 = vcmask 1042432   ;;  %vm524_vm6 = vcmask 1043456  }
  0x2b   :  { %1216 = vmatpush3.bf16.msra.mxu0 %v1371_v1  ;;  %1244 = vmatpush3.bf16.msra.mxu1 %v1372_v2  ;;  %v1378_v8 = vld [vmem:[#allocation5 + $0x60] sm:$0xff]   ;;  %v1380_v10 = vld [vmem:[#allocation5 + $0x58] sm:$0xff]   ;;  %v1381_v11 = vld [vmem:[#allocation5 + $0x10] sm:$0xff]   ;;  %s1518_s0 = smov 16   ;;  %s1519_s2 = smov 32  }
  0x2c   :  { %1217 = vmatprep.subr.bf16.mxu0 %v1516_v0  ;;  %1245 = vmatprep.subr.bf16.mxu1 %v1516_v0  ;;  %v1382_v12 = vld [vmem:[#allocation5 + $0x50] sm:$0xff]   ;;  %v1383_v13 = vld [vmem:[#allocation5 + $0x8] sm:$0xff]   ;;  %v1385_v15 = vld [vmem:[#allocation5] sm:$0xff]  }
  0x2d   :  { %v1384_v14 = vld [vmem:[#allocation5 + $0x48] sm:$0xff]   ;;  %v64_v16 = vld [vmem:[#allocation2] sm:$0xff]  ;;  %v1386_v17 = vld [vmem:[#allocation5 + $0x40] sm:$0xff]  }
  0x2e   :  { %v65_v18 = vld [vmem:[#allocation2 + $0x8] sm:$0xff]  ;;  %v1388_v21 = vld [vmem:[#allocation5 + $0xb0] sm:$0xff]   ;;  %v66_v22 = vld [vmem:[#allocation2 + $0x10] sm:$0xff] }
  0x2f   :  { %1218 = vmatpush3.bf16.msra.mxu0 %v1373_v3  ;;  %1246 = vmatpush3.bf16.msra.mxu1 %v1374_v4  ;;  %v1387_v19 = vld [vmem:[#allocation5 + $0xb8] sm:$0xff]   ;;  %v70_v20 = vpack.c.bf16 %v65_v18, %v64_v16  ;;  %v67_v23 = vld [vmem:[#allocation2 + $0x18] sm:$0xff]  ;;  %v1390_v26 = vld [vmem:[#allocation5 + $0xa0] sm:$0xff]  }
  0x30   :  { %1219 = vmatprep.subr.bf16.mxu0 %v1516_v0  ;;  %1247 = vmatprep.subr.bf16.mxu1 %v1516_v0  ;;  %v1389_v24 = vld [vmem:[#allocation5 + $0xa8] sm:$0xff]   ;;  %v71_v25 = vpack.c.bf16 %v67_v23, %v66_v22  ;;  %v68_v27 = vld [vmem:[#allocation2 + $0x20] sm:$0xff]  ;;  %v69_v28 = vld [vmem:[#allocation2 + $0x28] sm:$0xff] }
  0x31   :  { %v72_v29 = vpack.c.bf16 %v69_v28, %v68_v27  ;;  %v1391_v30 = vld [vmem:[#allocation5 + $0x98] sm:$0xff]   ;;  %v1392_v31 = vld [vmem:[#allocation5 + $0x90] sm:$0xff]   ;;  %v1393_v32 = vld [vmem:[#allocation5 + $0x88] sm:$0xff]  }
  0x32   :  { %v1394_v33 = vld [vmem:[#allocation5 + $0x80] sm:$0xff]  }
  0x33   :  { %1220 = vmatpush3.bf16.msra.mxu0 %v1375_v5  ;;  %1248 = vmatpush3.bf16.msra.mxu1 %v1376_v6 }
  0x34   :  { %1221 = vmatprep.subr.bf16.mxu0 %v1516_v0  ;;  %1249 = vmatprep.subr.bf16.mxu1 %v1516_v0 }
  0x37   :  { %1222 = vmatpush3.bf16.msra.mxu0 %v1377_v7  ;;  %1250 = vmatpush3.bf16.msra.mxu1 %v1378_v8 }
  0x38   :  { %1223 = vmatprep.subr.bf16.mxu0 %v1516_v0  ;;  %1251 = vmatprep.subr.bf16.mxu1 %v1516_v0 }
  0x3b   :  { %1224 = vmatpush3.bf16.msra.mxu0 %v1379_v9  ;;  %1252 = vmatpush3.bf16.msra.mxu1 %v1380_v10 }
  0x3c   :  { %1225 = vmatprep.subr.bf16.mxu0 %v1516_v0  ;;  %1253 = vmatprep.subr.bf16.mxu1 %v1516_v0 }
  0x3f   :  { %1226 = vmatpush3.bf16.msra.mxu0 %v1381_v11  ;;  %1254 = vmatpush3.bf16.msra.mxu1 %v1382_v12 }
  0x40   :  { %1227 = vmatprep.subr.bf16.mxu0 %v1516_v0  ;;  %1255 = vmatprep.subr.bf16.mxu1 %v1516_v0 }
  0x43   :  { %1228 = vmatpush3.bf16.msra.mxu0 %v1383_v13  ;;  %1256 = vmatpush3.bf16.msra.mxu1 %v1384_v14 }
  0x44   :  { %1229 = vmatprep.subr.bf16.mxu0 %v1516_v0  ;;  %1257 = vmatprep.subr.bf16.mxu1 %v1516_v0 }
  0x47   :  { %1230 = vmatpush3.bf16.msra.mxu0 %v1385_v15  ;;  %1258 = vmatpush3.bf16.msra.mxu1 %v1386_v17 }
  0x48   :  { %1271 = vmatprep.subr.bf16.mxu0 %v1516_v0 }
  0x4a   :  { %1232 = vmatmul.mubr.bf16.vlgmr.msra.gmra.mxu0 %v70_v20  ;;  %1260 = vmatmul.mubr.bf16.vlgmr.msra.gmra.mxu1 %v70_v20 }
  0x4b   :  { %1272 = vmatpush3.bf16.msra.mxu0 %v1387_v19  ;;  %1263 = vmatprep.mubr.msk.bf16.mxu1 %vm1517_vm0, %v1516_v0 }
  0x4c   :  { %1273 = vmatprep.subr.bf16.mxu0 %v1516_v0  ;;  %1235 = vmatprep.mubr.msk.bf16.mxu0 %vm1517_vm0, %v1516_v0 }
  0x4f   :  { %1274 = vmatpush3.bf16.msra.mxu0 %v1388_v21 }
  0x50   :  { %1275 = vmatprep.subr.bf16.mxu0 %v1516_v0 }
  0x52   :  { %1236 = vmatmul.mubr.bf16.gmra.mxu0 %v71_v25  ;;  %1264 = vmatmul.mubr.bf16.gmra.mxu1 %v71_v25 }
  0x53   :  { %1276 = vmatpush3.bf16.msra.mxu0 %v1389_v24  ;;  %1267 = vmatprep.mubr.msk.bf16.mxu1 %vm1517_vm0, %v1516_v0 }
  0x54   :  { %1277 = vmatprep.subr.bf16.mxu0 %v1516_v0  ;;  %1239 = vmatprep.mubr.msk.bf16.mxu0 %vm1517_vm0, %v1516_v0 }
  0x57   :  { %1278 = vmatpush3.bf16.msra.mxu0 %v1390_v26 }
  0x58   :  { %1279 = vmatprep.subr.bf16.mxu0 %v1516_v0 }
  0x5a   :  { %1240 = vmatmul.mubr.bf16.gmra.mxu0 %v72_v29  ;;  %1268 = vmatmul.mubr.bf16.gmra.mxu1 %v72_v29 }
  0x5b   :  { %1280 = vmatpush3.bf16.msra.mxu0 %v1391_v30  ;;  %1287 = vmatprep.mubr.msk.bf16.mxu0 %vm1517_vm0, %v1516_v0 }
  0x5c   :  { %1281 = vmatprep.subr.bf16.mxu0 %v1516_v0 }
  0x5f   :  { %1282 = vmatpush3.bf16.msra.mxu0 %v1392_v31 }
  0x60   :  { %1283 = vmatprep.subr.bf16.mxu0 %v1516_v0 }
  0x63   :  { %1284 = vmatpush3.bf16.msra.mxu0 %v1393_v32 }
  0x64   :  { %1285 = vmatprep.subr.bf16.mxu0 %v1516_v0 }
  0x67   :  { %1286 = vmatpush3.bf16.msra.mxu0 %v1394_v33 }
  0x6a   :  { %1288 = vmatmul.mubr.bf16.vlgmr.msra.gmra.mxu0 %v70_v20 }
  0x6b   :  { %1291 = vmatprep.mubr.msk.bf16.mxu0 %vm1517_vm0, %v1516_v0 }
  0x72   :  { %1292 = vmatmul.mubr.bf16.gmra.mxu0 %v71_v25 }
  0x73   :  { %1295 = vmatprep.mubr.msk.bf16.mxu0 %vm1517_vm0, %v1516_v0 }
  0x7a   :  { %1296 = vmatmul.mubr.bf16.gmra.mxu0 %v72_v29 }
 0x10a   :  { %v171_v34 = vpop.f32.mrf.mxu0  ;;  %v291_v35 = vpop.f32.mrf.mxu1 }
 0x10b   :  { %v443_v59 = vrot.slane %v291_v35, 1 }
 0x10c   :  { %v1233_v36 = vpop.f32.mrf.mxu0  ;;  %v1261_v37 = vpop.f32.mrf.mxu1 }
 0x10e   :  { %v174_v38 = vpop.f32.mrf.mxu0  ;;  %v294_v39 = vpop.f32.mrf.mxu1 }
 0x10f   :  { %v444_v60 = vrot.slane %v294_v39, 1 }
 0x110   :  { %v1234_v40 = vpop.f32.mrf.mxu0  ;;  %v1262_v41 = vpop.f32.mrf.mxu1 }
 0x111   :  { %v445_v0 = vsel %vm442_vm1, %v443_v59, %v444_v60 }
 0x112   :  { %v179_v42 = vpop.f32.mrf.mxu0  ;;  %v299_v43 = vpop.f32.mrf.mxu1  ;;  %v457_v6 = vadd.f32 %v445_v0, %v171_v34 }
 0x113   :  { %v446_v62 = vrot.slane %v299_v43, 1 }
 0x114   :  { %v1237_v44 = vpop.f32.mrf.mxu0  ;;  %v1265_v45 = vpop.f32.mrf.mxu1 }
 0x115   :  { %v447_v4 = vsel %vm442_vm1, %v444_v60, %v446_v62 }
 0x116   :  { %v181_v46 = vpop.f32.mrf.mxu0  ;;  %v302_v47 = vpop.f32.mrf.mxu1  ;;  %v458_v9 = vadd.f32 %v447_v4, %v174_v38 }
 0x117   :  { %v448_v15 = vrot.slane %v302_v47, 1 }
 0x118   :  { %v1238_v48 = vpop.f32.mrf.mxu0  ;;  %v1266_v49 = vpop.f32.mrf.mxu1 }
 0x11a   :  { %v186_v50 = vpop.f32.mrf.mxu0  ;;  %v307_v51 = vpop.f32.mrf.mxu1 }
 0x11b   :  { %v449_v16 = vrot.slane %v307_v51, 1 }
 0x11c   :  { %v1241_v52 = vpop.f32.mrf.mxu0  ;;  %v1269_v53 = vpop.f32.mrf.mxu1 }
 0x11d   :  { %v450_v24 = vsel %vm442_vm1, %v448_v15, %v449_v16  ;;  %v1396_v15 = vld [vmem:[#allocation7 + $0x78] sm:$0xff]  }
 0x11e   :  { %v189_v54 = vpop.f32.mrf.mxu0  ;;  %v310_v55 = vpop.f32.mrf.mxu1  ;;  %v459_v32 = vadd.f32 %v450_v24, %v181_v46  ;;  %1319 = vmatprep.subr.bf16.mxu0 %v1396_v15  ;;  %v1405_v24 = vld [vmem:[#allocation7 + $0x10] sm:$0xff]  }
 0x11f   :  { %v451_v21 = vrot.slane %v310_v55, 1  ;;  %1320 = vmatpush3.bf16.msra.mxu0 %v1396_v15  ;;  %v1418_v15 = vld [vmem:[#allocation7 + $0x80] sm:$0xff]  }
 0x120   :  { %v1242_v56 = vpop.f32.mrf.mxu0  ;;  %v1270_v57 = vpop.f32.mrf.mxu1 }
 0x121   :  { %v452_v30 = vsel %vm442_vm1, %v449_v16, %v451_v21  ;;  %v1397_v16 = vld [vmem:[#allocation7 + $0x30] sm:$0xff]   ;;  %v1402_v21 = vld [vmem:[#allocation7 + $0x60] sm:$0xff]  }
 0x122   :  { %v460_v37 = vadd.f32 %v452_v30, %v186_v50  ;;  %v1411_v30 = vld [vmem:[#allocation7 + $0xb8] sm:$0xff]  }
 0x12a   :  { %v413_v58 = vpop.f32.mrf.mxu0 }
 0x12b   :  { %v468_v1 = vrot.slane %v413_v58, 2 }
 0x12c   :  { %v1289_v61 = vpop.f32.mrf.mxu0 }
 0x12e   :  { %v416_v63 = vpop.f32.mrf.mxu0 }
 0x12f   :  { %v469_v2 = vrot.slane %v416_v63, 2 }
 0x130   :  { %v1290_v3 = vpop.f32.mrf.mxu0 }
 0x131   :  { %v470_v5 = vsel %vm467_vm2, %v468_v1, %v469_v2 }
 0x132   :  { %v421_v7 = vpop.f32.mrf.mxu0  ;;  %v1607_v10 = vadd.f32 %v470_v5, %v457_v6 }
 0x133   :  { %v471_v8 = vrot.slane %v421_v7, 2 }
 0x134   :  { %v1293_v11 = vpop.f32.mrf.mxu0  ;;  %v493_v17 = vmul.f32 %v1607_v10, %v1607_v10 }
 0x135   :  { %v472_v12 = vsel %vm467_vm2, %v469_v2, %v471_v8 }
 0x136   :  { %v1610_v13 = vadd.f32 %v472_v12, %v458_v9  ;;  %v424_v14 = vpop.f32.mrf.mxu0 }
 0x137   :  { %v473_v26 = vrot.slane %v424_v14, 2  ;;  %v1395_v14 = vld [vmem:[#allocation7 + $0x38] sm:$0xff]  }
 0x138   :  { %v486_v18 = vadd.f32 %v1610_v13, %v1607_v10  ;;  %v494_v19 = vmul.f32 %v1610_v13, %v1610_v13  ;;  %v1294_v20 = vpop.f32.mrf.mxu0  ;;  %1299 = vmatprep.subr.bf16.mxu1 %v1395_v14 }
 0x139   :  { %1300 = vmatpush3.bf16.msra.mxu1 %v1395_v14  ;;  %v1401_v20 = vld [vmem:[#allocation7 + $0x20] sm:$0xff]   ;;  %v1417_v14 = vld [vmem:[#allocation7 + $0x88] sm:$0xff]  }
 0x13a   :  { %v495_v22 = vadd.f32 %v494_v19, %v493_v17  ;;  %v429_v23 = vpop.f32.mrf.mxu0  ;;  %v487_v25 = vrot.slane %v486_v18, 4  ;;  %v1398_v17 = vld [vmem:[#allocation7 + $0x70] sm:$0xff]   ;;  %1301 = vmatprep.subr.bf16.mxu1 %v1397_v16  ;;  %v1400_v19 = vld [vmem:[#allocation7 + $0x68] sm:$0xff]  }
 0x13b   :  { %v474_v27 = vrot.slane %v429_v23, 2  ;;  %1321 = vmatprep.subr.bf16.mxu0 %v1398_v17  ;;  %v1404_v23 = vld [vmem:[#allocation7 + $0x58] sm:$0xff]  }
 0x13c   :  { %v496_v28 = vrot.slane %v495_v22, 4  ;;  %v1297_v29 = vpop.f32.mrf.mxu0  ;;  %v488_v35 = vadd.f32 %v487_v25, %v486_v18  ;;  %1322 = vmatpush3.bf16.msra.mxu0 %v1398_v17  ;;  %v1399_v18 = vld [vmem:[#allocation7 + $0x28] sm:$0xff]   ;;  %v1406_v25 = vld [vmem:[#allocation7 + $0x50] sm:$0xff]  }
 0x13d   :  { %v475_v31 = vsel %vm467_vm2, %v473_v26, %v474_v27  ;;  %1302 = vmatpush3.bf16.msra.mxu1 %v1397_v16  ;;  %1323 = vmatprep.subr.bf16.mxu0 %v1400_v19  ;;  %v1407_v26 = vld [vmem:[#allocation7 + $0x8] sm:$0xff]   ;;  %v1410_v29 = vld [vmem:[#allocation7 + $0x40] sm:$0xff]  }
 0x13e   :  { %v432_v33 = vpop.f32.mrf.mxu0  ;;  %v497_v34 = vadd.f32 %v496_v28, %v495_v22  ;;  %v1621_v38 = vadd.f32 %v475_v31, %v459_v32  ;;  %v489_v43 = vrot.slane %v488_v35, 2  ;;  %1303 = vmatprep.subr.bf16.mxu1 %v1399_v18  ;;  %v1403_v22 = vld [vmem:[#allocation7 + $0x18] sm:$0xff]   ;;  %v1409_v28 = vld [vmem:[#allocation7] sm:$0xff]  }
 0x13f   :  { %v476_v36 = vrot.slane %v432_v33, 2 }
 0x140   :  { %v1298_v39 = vpop.f32.mrf.mxu0  ;;  %v498_v41 = vrot.slane %v497_v34, 2  ;;  %v509_v44 = vmul.f32 %v1621_v38, %v1621_v38  ;;  %v490_v50 = vadd.f32 %v489_v43, %v488_v35  ;;  %1324 = vmatpush3.bf16.msra.mxu0 %v1400_v19 }
 0x141   :  { %v477_v40 = vsel %vm467_vm2, %v474_v27, %v476_v36  ;;  %1304 = vmatpush3.bf16.msra.mxu1 %v1399_v18  ;;  %1325 = vmatprep.subr.bf16.mxu0 %v1402_v21  ;;  %v1408_v27 = vld [vmem:[#allocation7 + $0x48] sm:$0xff]  }
 0x142   :  { %v1624_v42 = vadd.f32 %v477_v40, %v460_v37  ;;  %v499_v47 = vadd.f32 %v498_v41, %v497_v34  ;;  %v491_v56 = vrot.slane %v490_v50, 1  ;;  %1305 = vmatprep.subr.bf16.mxu1 %v1401_v20  ;;  %v553_v40 = vlaneseq }
 0x144   :  { %v502_v45 = vadd.f32 %v1624_v42, %v1621_v38  ;;  %v510_v46 = vmul.f32 %v1624_v42, %v1624_v42  ;;  %v500_v53 = vrot.slane %v499_v47, 1  ;;  %v492_v62 = vadd.f32 %v491_v56, %v490_v50  ;;  %1326 = vmatpush3.bf16.msra.mxu0 %v1402_v21  ;;  %v61_v50 = vld [vmem:[%s1715_s3 + $0x1] sm:$0x1] }
 0x145   :  { %1306 = vmatpush3.bf16.msra.mxu1 %v1401_v20  ;;  %1327 = vmatprep.subr.bf16.mxu0 %v1404_v23  ;;  %v554_v41 = vshrl.u32 %v553_v40, 7 }
 0x146   :  { %v503_v48 = vrot.slane %v502_v45, 4  ;;  %v511_v49 = vadd.f32 %v510_v46, %v509_v44  ;;  %v501_v59 = vadd.f32 %v500_v53, %v499_v47  ;;  %1307 = vmatprep.subr.bf16.mxu1 %v1403_v22  ;;  %v60_v44 = vld [vmem:[%s1715_s3] sm:$0x1] }
 0x148   :  { %v504_v51 = vadd.f32 %v503_v48, %v502_v45  ;;  %v512_v52 = vrot.slane %v511_v49, 4  ;;  %v519_v1 = vsel %vm518_vm3, %v492_v62, %v501_v59  ;;  %1328 = vmatpush3.bf16.msra.mxu0 %v1404_v23  ;;  %v1643_v45 = vsub.s32 0, %v554_v41 }
 0x149   :  { %1308 = vmatpush3.bf16.msra.mxu1 %v1403_v22  ;;  %1329 = vmatprep.subr.bf16.mxu0 %v1406_v25 }
 0x14a   :  { %v505_v54 = vrot.slane %v504_v51, 2  ;;  %v513_v55 = vadd.f32 %v512_v52, %v511_v49  ;;  %1309 = vmatprep.subr.bf16.mxu1 %v1405_v24 }
 0x14c   :  { %v506_v57 = vadd.f32 %v505_v54, %v504_v51  ;;  %v514_v58 = vrot.slane %v513_v55, 2  ;;  %1330 = vmatpush3.bf16.msra.mxu0 %v1406_v25 }
 0x14d   :  { %1310 = vmatpush3.bf16.msra.mxu1 %v1405_v24  ;;  %1331 = vmatprep.subr.bf16.mxu0 %v1408_v27 }
 0x14e   :  { %v507_v60 = vrot.slane %v506_v57, 1  ;;  %v515_v61 = vadd.f32 %v514_v58, %v513_v55  ;;  %1311 = vmatprep.subr.bf16.mxu1 %v1407_v26 }
 0x150   :  { %v508_v63 = vadd.f32 %v507_v60, %v506_v57  ;;  %v516_v0 = vrot.slane %v515_v61, 1  ;;  %1332 = vmatpush3.bf16.msra.mxu0 %v1408_v27 }
 0x151   :  { %1312 = vmatpush3.bf16.msra.mxu1 %v1407_v26  ;;  %1333 = vmatprep.subr.bf16.mxu0 %v1410_v29 }
 0x152   :  { %v517_v2 = vadd.f32 %v516_v0, %v515_v61  ;;  %v521_v3 = vsel %vm520_vm4, %v519_v1, %v508_v63  ;;  %1313 = vmatprep.subr.bf16.mxu1 %v1409_v28 }
 0x154   :  { %v523_v4 = vsel %vm522_vm5, %v521_v3, %v517_v2  ;;  %1334 = vmatpush3.bf16.msra.mxu0 %v1410_v29 }
 0x155   :  { %v525_v5 = vsel %vm524_vm6, %v523_v4, 0.0  ;;  %1314 = vmatpush3.bf16.msra.mxu1 %v1409_v28 }
 0x156   :  { %526 = vrot.lane.b32.xlu0 %v525_v5, %s1514_s26  ;;  %1339 = vmatprep.subr.bf16.mxu1 %v1411_v30 }
 0x1c8   :  { %v527_v6 = vpop.permute.xlu0 %526 }
 0x1c9   :  { %v528_v7 = vadd.f32 %v527_v6, %v525_v5 }
 0x1cb   :  { %529 = vrot.lane.b32.xlu0 %v528_v7, %s1518_s0 }
 0x23d   :  { %v530_v8 = vpop.permute.xlu0 %529 }
 0x23e   :  { %v531_v9 = vadd.f32 %v530_v8, %v528_v7 }
 0x240   :  { %532 = vrot.lane.b32.xlu1 %v531_v9, %s1519_s2 }
 0x2b2   :  { %v533_v11 = vpop.permute.xlu1 %532 }
 0x2b3   :  { %v534_v12 = vadd.f32 %v533_v11, %v531_v9  ;;  %v1412_v9 = vld [vmem:[#allocation7 + $0xb0] sm:$0xff]   ;;  %v1414_v11 = vld [vmem:[#allocation7 + $0xa0] sm:$0xff]  }
 0x2b5   :  { %535 = vrot.lane.b32.xlu1 %v534_v12, %s1510_s18 }
 0x327   :  { %v536_v31 = vpop.permute.xlu1 %535 }
 0x328   :  { %v537_v32 = vadd.f32 %v536_v31, %v534_v12  ;;  %v1416_v12 = vld [vmem:[#allocation7 + $0x90] sm:$0xff]  }
 0x32a   :  { %v538_v33 = vmul.f32 0.00390625, %v537_v32 }
 0x32c   :  { %v539_v34 = vmul.f32 %v538_v33, %v538_v33 }
 0x32e   :  { %v541_v35 = vrot.slane %v539_v34, 7 }
 0x330   :  { %v543_v36 = vsub.f32 %v538_v33, %v541_v35 }
 0x332   :  { %v544_v37 = vmax.f32 %v543_v36, 0.0 }
 0x334   :  { %v545_v39 = vadd.f32 1e-05, %v544_v37 }
 0x336   :  { %1419 = vrsqrt.f32 %v545_v39 }
 0x343   :  { %v1420_v43 = vpop.eup %1419 }
 0x344   :  { %v548_v46 = vrot.slane %v1420_v43, 1  ;;  %v568_v47 = vrot.slane %v1420_v43, 3 }
 0x346   :  { %v550_v48 = vmul.f32 %v548_v46, %v60_v44  ;;  %v570_v49 = vmul.f32 %v568_v47, %v60_v44 }
 0x348   :  { %v551_v51 = vmul.f32 %v550_v48, %v538_v33  ;;  %v572_v52 = vrot.slane %v570_v49, 6  ;;  %v556_v53 = vrot.slane %v550_v48, %v1643_v45  ;;  %v582_v56 = vrot.slane %v570_v49, %v1643_v45 }
 0x34a   :  { %v574_v54 = vmul.f32 %v572_v52, %v538_v33  ;;  %v552_v55 = vsub.f32 %v61_v50, %v551_v51  ;;  %v557_v58 = vmul.f32 %v556_v53, %v1607_v10  ;;  %v558_v59 = vmul.f32 %v556_v53, %v1610_v13 }
 0x34b   :  { %v583_v0 = vmul.f32 %v582_v56, %v1621_v38  ;;  %v584_v4 = vmul.f32 %v582_v56, %v1624_v42  ;;  %v1413_v38 = vld [vmem:[#allocation7 + $0xa8] sm:$0xff]   ;;  %v1415_v42 = vld [vmem:[#allocation7 + $0x98] sm:$0xff]  }
 0x34c   :  { %v576_v57 = vrot.slane %v574_v54, 2  ;;  %v562_v60 = vrot.slane %v552_v55, %v1643_v45 }
 0x34e   :  { %v578_v61 = vsub.f32 %v61_v50, %v576_v57  ;;  %v563_v62 = vadd.f32 %v562_v60, %v557_v58  ;;  %v564_v63 = vadd.f32 %v562_v60, %v558_v59 }
 0x350   :  { %v588_v1 = vrot.slane %v578_v61, %v1643_v45  ;;  %v565_v2 = vmax.f32 %v563_v62, 0.0  ;;  %v566_v3 = vmax.f32 %v564_v63, 0.0 }
 0x352   :  { %v567_v5 = vpack.c.bf16 %v566_v3, %v565_v2  ;;  %v589_v6 = vadd.f32 %v588_v1, %v583_v0  ;;  %v590_v7 = vadd.f32 %v588_v1, %v584_v4 }
 0x354   :  { %1315 = vmatprep.mubr.bf16.mxu1 %v567_v5  ;;  %1335 = vmatprep.mubr.bf16.mxu0 %v567_v5  ;;  %v591_v10 = vmax.f32 %v589_v6, 0.0  ;;  %v592_v13 = vmax.f32 %v590_v7, 0.0 }
 0x356   :  { %v593_v8 = vpack.c.bf16 %v592_v13, %v591_v10 }
 0x358   :  { %1316 = vmatmul.mubr.bf16.vlgmr.msra.gmra.mxu1 %v593_v8  ;;  %1336 = vmatmul.mubr.bf16.vlgmr.msra.gmra.mxu0 %v593_v8 }
 0x359   :  { %1340 = vmatpush3.bf16.msra.mxu1 %v1411_v30  ;;  %1355 = vmatprep.mubr.bf16.mxu1 %v567_v5 }
 0x35a   :  { %1341 = vmatprep.subr.bf16.mxu1 %v1412_v9 }
 0x35d   :  { %1342 = vmatpush3.bf16.msra.mxu1 %v1412_v9 }
 0x35e   :  { %1343 = vmatprep.subr.bf16.mxu1 %v1413_v38 }
 0x361   :  { %1344 = vmatpush3.bf16.msra.mxu1 %v1413_v38 }
 0x362   :  { %1345 = vmatprep.subr.bf16.mxu1 %v1414_v11 }
 0x365   :  { %1346 = vmatpush3.bf16.msra.mxu1 %v1414_v11 }
 0x366   :  { %1347 = vmatprep.subr.bf16.mxu1 %v1415_v42 }
 0x369   :  { %1348 = vmatpush3.bf16.msra.mxu1 %v1415_v42 }
 0x36a   :  { %1349 = vmatprep.subr.bf16.mxu1 %v1416_v12 }
 0x36d   :  { %1350 = vmatpush3.bf16.msra.mxu1 %v1416_v12 }
 0x36e   :  { %1351 = vmatprep.subr.bf16.mxu1 %v1417_v14 }
 0x371   :  { %1352 = vmatpush3.bf16.msra.mxu1 %v1417_v14 }
 0x372   :  { %1353 = vmatprep.subr.bf16.mxu1 %v1418_v15 }
 0x375   :  { %1354 = vmatpush3.bf16.msra.mxu1 %v1418_v15 }
 0x378   :  { %1356 = vmatmul.mubr.bf16.vlgmr.msra.gmra.mxu1 %v593_v8 }
 0x418   :  { %v1317_v16 = vpop.f32.mrf.mxu1  ;;  %v1337_v19 = vpop.f32.mrf.mxu0 }
 0x419   :  { %v973_v21 = vrot.slane %v1317_v16, 7 }
 0x41a   :  { %v692_v17 = vpop.f32.mrf.mxu1  ;;  %v806_v23 = vpop.f32.mrf.mxu0 }
 0x41b   :  { %v937_v25 = vrot.slane %v692_v17, 7  ;;  %v978_v28 = vsel %vm518_vm3, 0.0, %v973_v21 }
 0x41c   :  { %v1318_v18 = vpop.f32.mrf.mxu1  ;;  %v1338_v30 = vpop.f32.mrf.mxu0  ;;  %v979_v35 = vadd.f32 %v1337_v19, %v978_v28 }
 0x41d   :  { %v974_v22 = vrot.slane %v1318_v18, 7  ;;  %v942_v32 = vsel %vm518_vm3, 0.0, %v937_v25 }
 0x41e   :  { %v695_v20 = vpop.f32.mrf.mxu1  ;;  %v943_v46 = vadd.f32 %v942_v32, %v806_v23  ;;  %v809_v47 = vpop.f32.mrf.mxu0 }
 0x41f   :  { %v938_v26 = vrot.slane %v695_v20, 7  ;;  %v975_v29 = vsel %vm518_vm3, %v973_v21, %v974_v22 }
 0x420   :  { %v980_v36 = vadd.f32 %v1338_v30, %v975_v29 }
 0x421   :  { %v939_v37 = vsel %vm518_vm3, %v937_v25, %v938_v26 }
 0x422   :  { %v944_v50 = vadd.f32 %v939_v37, %v809_v47 }
 0x438   :  { %v1357_v24 = vpop.f32.mrf.mxu1 }
 0x439   :  { %v983_v33 = vrot.slane %v1357_v24, 1 }
 0x43a   :  { %v920_v27 = vpop.f32.mrf.mxu1 }
 0x43b   :  { %v947_v40 = vrot.slane %v920_v27, 1 }
 0x43c   :  { %v1358_v31 = vpop.f32.mrf.mxu1 }
 0x43d   :  { %v984_v34 = vrot.slane %v1358_v31, 1 }
 0x43e   :  { %v923_v39 = vpop.f32.mrf.mxu1 }
 0x43f   :  { %v985_v41 = vsel %vm442_vm1, %v983_v33, %v984_v34  ;;  %v988_v43 = vsel %vm442_vm1, %v984_v34, 0.0  ;;  %v948_v44 = vrot.slane %v923_v39, 1 }
 0x440   :  { %v1662_v48 = vadd.f32 %v985_v41, %v979_v35  ;;  %v1664_v49 = vadd.f32 %v988_v43, %v980_v36  ;;  %v62_v41 = vld [vmem:[%s1715_s3 + $0x2] sm:$0x1] }
 0x441   :  { %v949_v51 = vsel %vm442_vm1, %v947_v40, %v948_v44  ;;  %v952_v52 = vsel %vm442_vm1, %v948_v44, 0.0 }
 0x442   :  { %v991_v53 = vadd.f32 %v1664_v49, %v1662_v48  ;;  %v998_v54 = vmul.f32 %v1662_v48, %v1662_v48  ;;  %v999_v55 = vmul.f32 %v1664_v49, %v1664_v49  ;;  %v1674_v56 = vadd.f32 %v949_v51, %v943_v46 }
 0x443   :  { %v1676_v57 = vadd.f32 %v952_v52, %v944_v50  ;;  %v63_v50 = vld [vmem:[%s1715_s3 + $0x3] sm:$0x1]  ;;  %s1520_s3 = smov [#allocation8]  }
 0x444   :  { %v992_v58 = vrot.slane %v991_v53, 4  ;;  %v1000_v59 = vadd.f32 %v999_v55, %v998_v54  ;;  %v962_v60 = vmul.f32 %v1674_v56, %v1674_v56  ;;  %v1038_v55 = vld [vmem:[#allocation2 + $0x1] sm:$0xff]  ;;  %s1091_s15 = sshll.u32 %s1520_s3, 4  ;;  %s1092_s15 = int_to_ptr.vmem [resolvable:$true] %s1091_s15 }
 0x445   :  { %v955_v61 = vadd.f32 %v1676_v57, %v1674_v56  ;;  %v963_v62 = vmul.f32 %v1676_v57, %v1676_v57  ;;  %s1483_s16 = scalar_lea.vmem %s1092_s15, 512  ;;  %p1488_p2 = scmp.lt.s32.totalorder %s1092_s15, %s1092_s15 }
 0x446   :  { %v993_v63 = vadd.f32 %v992_v58, %v991_v53  ;;  %v1001_v0 = vrot.slane %v1000_v59, 4  ;;  %v1039_v58 = vld [vmem:[#allocation2 + $0x9] sm:$0xff]  ;;  %p1484_p1 = scmp.ne.s32.totalorder %s1092_s15, %s1483_s16  ;;  %p1489_p3 = scmp.lt.s32.totalorder %s1483_s16, %s1483_s16 }
 0x447   :  { %v956_v1 = vrot.slane %v955_v61, 4  ;;  %v964_v2 = vadd.f32 %v963_v62, %v962_v60 }
 0x448   :  { %v994_v3 = vrot.slane %v993_v63, 2  ;;  %v1002_v4 = vadd.f32 %v1001_v0, %v1000_v59  ;;  %p1490_p4 = por %p1489_p3, %p1488_p2 }
 0x449   :  { %v957_v5 = vadd.f32 %v956_v1, %v955_v61  ;;  %v965_v6 = vrot.slane %v964_v2, 4 }
 0x44a   :  { %v1003_v7 = vrot.slane %v1002_v4, 2  ;;  %v995_v8 = vadd.f32 %v994_v3, %v993_v63  ;;  %p1491_p5 = pnand %p1490_p4, %p1484_p1 }
 0x44b   :  { %v958_v10 = vrot.slane %v957_v5, 2  ;;  %v966_v13 = vadd.f32 %v965_v6, %v964_v2  ;;  %v1068_v6 = vld [vmem:[#allocation2 + $0x21] sm:$0xff] }
 0x44c   :  { %v1004_v11 = vadd.f32 %v1003_v7, %v1002_v4  ;;  %v996_v14 = vrot.slane %v995_v8, 1 }
 0x44d   :  { %v959_v9 = vadd.f32 %v958_v10, %v957_v5  ;;  %v967_v38 = vrot.slane %v966_v13, 2  ;;  %v1067_v5 = vld [vmem:[#allocation2 + $0x19] sm:$0xff] }
 0x44e   :  { %v1005_v16 = vrot.slane %v1004_v11, 1  ;;  %v997_v19 = vadd.f32 %v996_v14, %v995_v8 }
 0x44f   :  { %v960_v42 = vrot.slane %v959_v9, 1  ;;  %v968_v12 = vadd.f32 %v967_v38, %v966_v13 }
 0x450   :  { %v1006_v20 = vadd.f32 %v1005_v16, %v1004_v11 }
 0x451   :  { %v969_v15 = vrot.slane %v968_v12, 1  ;;  %v961_v17 = vadd.f32 %v960_v42, %v959_v9 }
 0x453   :  { %v970_v18 = vadd.f32 %v969_v15, %v968_v12 }
 0x455   :  { %v1007_v21 = vsel %vm518_vm3, %v961_v17, %v970_v18 }
 0x456   :  { %v1008_v22 = vsel %vm520_vm4, %v1007_v21, %v997_v19 }
 0x457   :  { %v1009_v23 = vsel %vm522_vm5, %v1008_v22, %v1006_v20 }
 0x458   :  { %v1010_v24 = vsel %vm524_vm6, %v1009_v23, 0.0 }
 0x459   :  { %1011 = vrot.lane.b32.xlu0 %v1010_v24, %s1514_s26 }
 0x4cb   :  { %v1012_v25 = vpop.permute.xlu0 %1011 }
 0x4cc   :  { %v1013_v26 = vadd.f32 %v1012_v25, %v1010_v24 }
 0x4ce   :  { %1014 = vrot.lane.b32.xlu1 %v1013_v26, %s1518_s0 }
 0x540   :  { %v1015_v27 = vpop.permute.xlu1 %1014 }
 0x541   :  { %v1016_v28 = vadd.f32 %v1015_v27, %v1013_v26 }
 0x543   :  { %1017 = vrot.lane.b32.xlu0 %v1016_v28, %s1519_s2 }
 0x5b5   :  { %v1018_v29 = vpop.permute.xlu0 %1017 }
 0x5b6   :  { %v1019_v30 = vadd.f32 %v1018_v29, %v1016_v28 }
 0x5b8   :  { %1020 = vrot.lane.b32.xlu1 %v1019_v30, %s1510_s18 }
 0x62a   :  { %v1021_v31 = vpop.permute.xlu1 %1020 }
 0x62b   :  { %v1022_v32 = vadd.f32 %v1021_v31, %v1019_v30 }
 0x62d   :  { %v1023_v33 = vmul.f32 0.00390625, %v1022_v32 }
 0x62f   :  { %v1024_v34 = vmul.f32 %v1023_v33, %v1023_v33 }
 0x631   :  { %v1026_v35 = vrot.slane %v1024_v34, 7 }
 0x633   :  { %v1028_v36 = vsub.f32 %v1023_v33, %v1026_v35 }
 0x635   :  { %v1029_v37 = vmax.f32 %v1028_v36, 0.0 }
 0x637   :  { %v1030_v39 = vadd.f32 1e-05, %v1029_v37 }
 0x639   :  { %1421 = vrsqrt.f32 %v1030_v39 }
 0x646   :  { %v1422_v40 = vpop.eup %1421 }
 0x647   :  { %v1033_v43 = vrot.slane %v1422_v40, 1  ;;  %v1056_v44 = vrot.slane %v1422_v40, 3 }
 0x649   :  { %v1035_v46 = vmul.f32 %v1033_v43, %v62_v41  ;;  %v1058_v47 = vmul.f32 %v1056_v44, %v62_v41 }
 0x64b   :  { %v1036_v51 = vmul.f32 %v1035_v46, %v1023_v33  ;;  %v1043_v52 = vrot.slane %v1035_v46, %v1643_v45  ;;  %v1060_v53 = vrot.slane %v1058_v47, 6  ;;  %v1072_v54 = vrot.slane %v1058_v47, %v1643_v45 }
 0x64d   :  { %v1037_v59 = vsub.f32 %v63_v50, %v1036_v51  ;;  %v1062_v60 = vmul.f32 %v1060_v53, %v1023_v33  ;;  %v1044_v61 = vmul.f32 %v1043_v52, %v1674_v56  ;;  %v1045_v62 = vmul.f32 %v1043_v52, %v1676_v57 }
 0x64e   :  { %v1073_v63 = vmul.f32 %v1072_v54, %v1662_v48  ;;  %v1074_v0 = vmul.f32 %v1072_v54, %v1664_v49 }
 0x64f   :  { %v1064_v1 = vrot.slane %v1062_v60, 2  ;;  %v1046_v2 = vadd.f32 %v1044_v61, %v1038_v55  ;;  %v1047_v3 = vadd.f32 %v1045_v62, %v1039_v58  ;;  %v1051_v4 = vrot.slane %v1037_v59, %v1643_v45 }
 0x650   :  { %v1075_v56 = vadd.f32 %v1073_v63, %v1067_v5  ;;  %v1076_v57 = vadd.f32 %v1074_v0, %v1068_v6 }
 0x651   :  { %v1066_v7 = vsub.f32 %v63_v50, %v1064_v1  ;;  %v1052_v10 = vadd.f32 %v1051_v4, %v1046_v2  ;;  %v1053_v13 = vadd.f32 %v1051_v4, %v1047_v3 }
 0x653   :  { %1054 = vst [vmem:[#allocation8] sm:$0xff] %v1052_v10  ;;  %1055 = vst [vmem:[#allocation8 + $0x8] sm:$0xff] %v1053_v13  ;;  %v1080_v48 = vrot.slane %v1066_v7, %v1643_v45 }
 0x655   :  { %v1081_v8 = vadd.f32 %v1080_v48, %v1075_v56  ;;  %v1082_v49 = vadd.f32 %v1080_v48, %v1076_v57 }
 0x657   :  { %1084 = vst [vmem:[#allocation8 + $0x10] sm:$0xff] %v1081_v8  ;;  %1085 = vst [vmem:[#allocation8 + $0x18] sm:$0xff] %v1082_v49 }
 0x658   :  { %1494 = shalt.err (!%p1491_p5)
}
 0x659   :  { %1097 = dma.vmem_to_hbm [thread:$0]  %s1092_s15, 512, %s1716_s4, [#allocation4], %s1513_s25, %s1513_s25, %s1514_s26  }
 0x65a   :  { %1507 = dma.done.wait [#allocation4], 512  }
 0x65b   :  { %1508 = vsyncadd [#allocation4], 4294966784 }
 0x65c   :  { %1101 = vsyncpa [#allocation3], 1 }
 0x65d   :  { %1102 = vsyncpa [#allocation6], 1 }
 0x65e   :  { %1103 = vsyncpa [#allocation4], 1 }

</bundles_post_ra>
